<compile_context>
chip_gen: v7x
topology: tpu7x:2x2x1
jax: 0.10.0
libtpu: 0.0.40
codegen_flags: <defaults>
</compile_context>

<pallas_src>
import functools

import jax
import jax.numpy as jnp
from jax import lax
from jax.experimental import pallas as pl
from jax.experimental.pallas import tpu as pltpu


def _lstm_net_kernel(x2d_ref, wih_ref, whh_ref, b_ref, wlin_ref, blin_ref,
                     out_ref, h_scr, c_scr, xp_scr, hs_scr, *, T, B, H):
    # ---- Hoisted input projection: one MXU call for all timesteps. ----------
    # (T*B, I) @ (I, 4H) + bias  ->  (T*B, 4H), bias broadcast folded in once.
    xp_scr[...] = (jnp.dot(x2d_ref[...], wih_ref[...],
                           preferred_element_type=jnp.float32)
                   + b_ref[...])

    h_scr[...] = jnp.zeros_like(h_scr)
    c_scr[...] = jnp.zeros_like(c_scr)

    whh = whh_ref[...]                      # (H, 4H), loaded once

    def step(t, carry):
        row = pl.multiple_of(t * B, B)      # aligned sublane offset
        h = h_scr[...]                      # (B, H)
        c = c_scr[...]                      # (B, H)

        # Only the recurrence-critical matmul stays in the loop.
        gates = (jnp.dot(h, whh, preferred_element_type=jnp.float32)
                 + xp_scr[pl.ds(row, B), :])            # (B, 4H)

        # Full-width (8, 128) EUP pushes; slice afterwards.
        sig = jax.nn.sigmoid(gates)
        th = jnp.tanh(gates)
        i_g = sig[:, 0:H]
        f_g = sig[:, H:2 * H]
        g_g = th[:, 2 * H:3 * H]
        o_g = sig[:, 3 * H:4 * H]

        c_new = f_g * c + i_g * g_g
        h_new = o_g * jnp.tanh(c_new)

        h_scr[...] = h_new
        c_scr[...] = c_new
        hs_scr[pl.ds(row, B), :] = h_new    # stash for the hoisted Linear
        return carry

    lax.fori_loop(0, T, step, 0, unroll=True)

    # ---- Hoisted output Linear: one matmul + one bulk store. ----------------
    out_ref[...] = (jnp.dot(hs_scr[...], wlin_ref[...],
                            preferred_element_type=jnp.float32)
                    + blin_ref[...])


def lstm_net_forward(x, params, activation=None):
    """x: (B, T, I) float32, batch_first like the PyTorch module."""
    B, T, I = x.shape
    H = params["w_hh_t"].shape[0]
    O = params["w_lin_t"].shape[1]

    # Time-major, flattened to 2-D rows outside the kernel (free in XLA).
    x2d = jnp.transpose(x, (1, 0, 2)).reshape(T * B, I)   # row t*B+b = x[b, t]

    kernel = functools.partial(_lstm_net_kernel, T=T, B=B, H=H)

    out_flat = pl.pallas_call(
        kernel,
        out_shape=jax.ShapeDtypeStruct((T * B, O), jnp.float32),
        in_specs=[pl.BlockSpec(memory_space=pltpu.MemorySpace.VMEM)] * 6,
        out_specs=pl.BlockSpec(memory_space=pltpu.MemorySpace.VMEM),
        scratch_shapes=[
            pltpu.VMEM((B, H), jnp.float32),            # h state
            pltpu.VMEM((B, H), jnp.float32),            # c state
            pltpu.VMEM((T * B, 4 * H), jnp.float32),    # precomputed x@Wih + b
            pltpu.VMEM((T * B, H), jnp.float32),        # all hidden states
        ],
        compiler_params=pltpu.CompilerParams(
            vmem_limit_bytes=32 * 1024 * 1024),
    )(
        x2d,
        params["w_ih_t"],
        params["w_hh_t"],
        params["bias"],
        params["w_lin_t"],
        params["b_lin"],
    )

    out = jnp.transpose(out_flat.reshape(T, B, O), (1, 0, 2))  # (B, T, O)
    if activation == "tanh":
        out = jnp.tanh(out)
    return out


def init_params(key, input_size, hidden_size, output_size):
    """Deterministic PyTorch-style uniform(-1/sqrt(H), 1/sqrt(H)) init."""
    ks = jax.random.split(key, 6)
    bound = 1.0 / jnp.sqrt(jnp.float32(hidden_size))
    u = lambda k, shape: jax.random.uniform(k, shape, jnp.float32, -bound, bound)
    w_ih = u(ks[0], (4 * hidden_size, input_size))     # PyTorch weight_ih_l0
    w_hh = u(ks[1], (4 * hidden_size, hidden_size))    # PyTorch weight_hh_l0
    b_ih = u(ks[2], (4 * hidden_size,))
    b_hh = u(ks[3], (4 * hidden_size,))
    w_lin = u(ks[4], (output_size, hidden_size))       # nn.Linear weight
    b_lin = u(ks[5], (output_size,))
    return {
        "w_ih_t": w_ih.T,                              # (I, 4H)
        "w_hh_t": w_hh.T,                              # (H, 4H)
        "bias": (b_ih + b_hh).reshape(1, -1),          # (1, 4H)
        "w_lin_t": w_lin.T,                            # (H, O)
        "b_lin": b_lin.reshape(1, -1),                 # (1, O)
    }


def reference_forward(x, params, activation=None):
    """Pure-JAX reference (PyTorch LSTM semantics) for validation."""
    B, T, I = x.shape
    H = params["w_hh_t"].shape[0]
    h = jnp.zeros((B, H), jnp.float32)
    c = jnp.zeros((B, H), jnp.float32)
    outs = []
    for t in range(T):
        gates = x[:, t, :] @ params["w_ih_t"] + h @ params["w_hh_t"] + params["bias"]
        i_g = jax.nn.sigmoid(gates[:, 0:H])
        f_g = jax.nn.sigmoid(gates[:, H:2 * H])
        g_g = jnp.tanh(gates[:, 2 * H:3 * H])
        o_g = jax.nn.sigmoid(gates[:, 3 * H:4 * H])
        c = f_g * c + i_g * g_g
        h = o_g * jnp.tanh(c)
        outs.append(h @ params["w_lin_t"] + params["b_lin"])
    out = jnp.stack(outs, axis=1)
    if activation == "tanh":
        out = jnp.tanh(out)
    return out


if __name__ == "__main__":
    # Small shapes consistent with the module: input_size=1, output_size=1,
    # hidden_layer_size scaled down to 32 (so 4H = 128 = lane width),
    # batch=8, seq_len=8.
    B, T, I, H, O = 8, 8, 1, 32, 1

    key = jax.random.PRNGKey(0)
    k_x, k_p = jax.random.split(key)
    x = jax.random.normal(k_x, (B, T, I), jnp.float32)
    params = init_params(k_p, I, H, O)

    out = lstm_net_forward(x, params, activation=None)
    out = jax.block_until_ready(out)

    ref = reference_forward(x, params, activation=None)
    assert out.shape == (B, T, O)
    assert jnp.allclose(out, ref, atol=1e-5, rtol=1e-5), "mismatch vs reference"

    print("KERNEL_OK")
</pallas_src>

<mosaic_0001>
module attributes {stable_mosaic.version = 11 : i64} {
  func.func @_lstm_net_kernel(%arg0: memref<64x1xf32, #tpu.memory_space<vmem>>, %arg1: memref<1x128xf32, #tpu.memory_space<vmem>>, %arg2: memref<32x128xf32, #tpu.memory_space<vmem>>, %arg3: memref<1x128xf32, #tpu.memory_space<vmem>>, %arg4: memref<32x1xf32, #tpu.memory_space<vmem>>, %arg5: memref<1x1xf32, #tpu.memory_space<vmem>>, %arg6: memref<64x1xf32, #tpu.memory_space<vmem>>, %arg7: memref<8x32xf32, #tpu.memory_space<vmem>>, %arg8: memref<8x32xf32, #tpu.memory_space<vmem>>, %arg9: memref<64x128xf32, #tpu.memory_space<vmem>>, %arg10: memref<64x32xf32, #tpu.memory_space<vmem>>) attributes {dimension_semantics = [], scalar_prefetch = 0 : i64, scratch_operands = 4 : i64, tpu.core_type = #tpu.core_type<tc>} {
    %c0 = arith.constant 0 : index
    %c0_0 = arith.constant 0 : index
    %0 = vector.load %arg0[%c0, %c0_0] : memref<64x1xf32, #tpu.memory_space<vmem>>, vector<64x1xf32>
    %c0_1 = arith.constant 0 : index
    %c0_2 = arith.constant 0 : index
    %1 = vector.load %arg1[%c0_1, %c0_2] : memref<1x128xf32, #tpu.memory_space<vmem>>, vector<1x128xf32>
    %cst = arith.constant dense<0.000000e+00> : vector<64x128xf32>
    %2 = tpu.matmul %0, %1, %cst {dimension_numbers = #tpu.dot_dimension_numbers<[1], [0], [0], [1], [0, 0, 1, 1], [], []>} : vector<64x1xf32>, vector<1x128xf32>, vector<64x128xf32> -> vector<64x128xf32>
    %c0_3 = arith.constant 0 : index
    %c0_4 = arith.constant 0 : index
    %3 = vector.load %arg3[%c0_3, %c0_4] : memref<1x128xf32, #tpu.memory_space<vmem>>, vector<1x128xf32>
    %4 = vector.broadcast %3 : vector<1x128xf32> to vector<64x128xf32>
    %5 = arith.addf %2, %4 : vector<64x128xf32>
    %c0_5 = arith.constant 0 : index
    %c0_6 = arith.constant 0 : index
    %6 = vector.load %arg9[%c0_5, %c0_6] : memref<64x128xf32, #tpu.memory_space<vmem>>, vector<64x128xf32>
    tpu.vector_store %arg9[%c0_5, %c0_6], %5 {strides = array<i32>} : memref<64x128xf32, #tpu.memory_space<vmem>>, vector<64x128xf32>,
    %cst_7 = arith.constant 0.000000e+00 : f32
    %7 = vector.broadcast %cst_7 : f32 to vector<8x32xf32>
    %c0_8 = arith.constant 0 : index
    %c0_9 = arith.constant 0 : index
    %8 = vector.load %arg7[%c0_8, %c0_9] : memref<8x32xf32, #tpu.memory_space<vmem>>, vector<8x32xf32>
    tpu.vector_store %arg7[%c0_8, %c0_9], %7 {strides = array<i32>} : memref<8x32xf32, #tpu.memory_space<vmem>>, vector<8x32xf32>,
    %cst_10 = arith.constant 0.000000e+00 : f32
    %9 = vector.broadcast %cst_10 : f32 to vector<8x32xf32>
    %c0_11 = arith.constant 0 : index
    %c0_12 = arith.constant 0 : index
    %10 = vector.load %arg8[%c0_11, %c0_12] : memref<8x32xf32, #tpu.memory_space<vmem>>, vector<8x32xf32>
    tpu.vector_store %arg8[%c0_11, %c0_12], %9 {strides = array<i32>} : memref<8x32xf32, #tpu.memory_space<vmem>>, vector<8x32xf32>,
    %c0_13 = arith.constant 0 : index
    %c0_14 = arith.constant 0 : index
    %11 = vector.load %arg2[%c0_13, %c0_14] : memref<32x128xf32, #tpu.memory_space<vmem>>, vector<32x128xf32>
    %c0_i32 = arith.constant 0 : i32
    %c8_i32 = arith.constant 8 : i32
    %12 = arith.muli %c0_i32, %c8_i32 : i32
    %13 = tpu.assume_multiple %12, 8 : i32
    %c0_15 = arith.constant 0 : index
    %c0_16 = arith.constant 0 : index
    %14 = vector.load %arg7[%c0_15, %c0_16] : memref<8x32xf32, #tpu.memory_space<vmem>>, vector<8x32xf32>
    %c0_17 = arith.constant 0 : index
    %c0_18 = arith.constant 0 : index
    %15 = vector.load %arg8[%c0_17, %c0_18] : memref<8x32xf32, #tpu.memory_space<vmem>>, vector<8x32xf32>
    %cst_19 = arith.constant dense<0.000000e+00> : vector<8x128xf32>
    %16 = tpu.matmul %14, %11, %cst_19 {dimension_numbers = #tpu.dot_dimension_numbers<[1], [0], [0], [1], [0, 0, 1, 1], [], []>} : vector<8x32xf32>, vector<32x128xf32>, vector<8x128xf32> -> vector<8x128xf32>
    %17 = arith.index_cast %13 : i32 to index
    %c0_20 = arith.constant 0 : index
    %18 = vector.load %arg9[%17, %c0_20] : memref<64x128xf32, #tpu.memory_space<vmem>>, vector<8x128xf32>
    %19 = arith.addf %16, %18 : vector<8x128xf32>
    %20 = arith.negf %19 : vector<8x128xf32>
    %21 = math.exp %20 : vector<8x128xf32>
    %cst_21 = arith.constant 1.000000e+00 : f32
    %22 = vector.broadcast %cst_21 : f32 to vector<8x128xf32>
    %23 = arith.addf %22, %21 : vector<8x128xf32>
    %24 = arith.divf %22, %23 : vector<8x128xf32>
    %25 = math.tanh %19 : vector<8x128xf32>
    %26 = vector.extract_strided_slice %24 {offsets = [0, 0], sizes = [8, 32], strides = [1, 1]} : vector<8x128xf32> to vector<8x32xf32>
    %27 = vector.extract_strided_slice %24 {offsets = [0, 32], sizes = [8, 32], strides = [1, 1]} : vector<8x128xf32> to vector<8x32xf32>
    %28 = vector.extract_strided_slice %25 {offsets = [0, 64], sizes = [8, 32], strides = [1, 1]} : vector<8x128xf32> to vector<8x32xf32>
    %29 = vector.extract_strided_slice %24 {offsets = [0, 96], sizes = [8, 32], strides = [1, 1]} : vector<8x128xf32> to vector<8x32xf32>
    %30 = arith.mulf %27, %15 : vector<8x32xf32>
    %31 = arith.mulf %26, %28 : vector<8x32xf32>
    %32 = arith.addf %30, %31 : vector<8x32xf32>
    %33 = math.tanh %32 : vector<8x32xf32>
    %34 = arith.mulf %29, %33 : vector<8x32xf32>
    %c0_22 = arith.constant 0 : index
    %c0_23 = arith.constant 0 : index
    %35 = vector.load %arg7[%c0_22, %c0_23] : memref<8x32xf32, #tpu.memory_space<vmem>>, vector<8x32xf32>
    tpu.vector_store %arg7[%c0_22, %c0_23], %34 {strides = array<i32>} : memref<8x32xf32, #tpu.memory_space<vmem>>, vector<8x32xf32>,
    %c0_24 = arith.constant 0 : index
    %c0_25 = arith.constant 0 : index
    %36 = vector.load %arg8[%c0_24, %c0_25] : memref<8x32xf32, #tpu.memory_space<vmem>>, vector<8x32xf32>
    tpu.vector_store %arg8[%c0_24, %c0_25], %32 {strides = array<i32>} : memref<8x32xf32, #tpu.memory_space<vmem>>, vector<8x32xf32>,
    %37 = arith.index_cast %13 : i32 to index
    %c0_26 = arith.constant 0 : index
    %38 = vector.load %arg10[%37, %c0_26] : memref<64x32xf32, #tpu.memory_space<vmem>>, vector<8x32xf32>
    tpu.vector_store %arg10[%37, %c0_26], %34 {strides = array<i32>} : memref<64x32xf32, #tpu.memory_space<vmem>>, vector<8x32xf32>,
    %c1_i32 = arith.constant 1 : i32
    %c8_i32_27 = arith.constant 8 : i32
    %39 = arith.muli %c1_i32, %c8_i32_27 : i32
    %40 = tpu.assume_multiple %39, 8 : i32
    %c0_28 = arith.constant 0 : index
    %c0_29 = arith.constant 0 : index
    %41 = vector.load %arg7[%c0_28, %c0_29] : memref<8x32xf32, #tpu.memory_space<vmem>>, vector<8x32xf32>
    %c0_30 = arith.constant 0 : index
    %c0_31 = arith.constant 0 : index
    %42 = vector.load %arg8[%c0_30, %c0_31] : memref<8x32xf32, #tpu.memory_space<vmem>>, vector<8x32xf32>
    %cst_32 = arith.constant dense<0.000000e+00> : vector<8x128xf32>
    %43 = tpu.matmul %41, %11, %cst_32 {dimension_numbers = #tpu.dot_dimension_numbers<[1], [0], [0], [1], [0, 0, 1, 1], [], []>} : vector<8x32xf32>, vector<32x128xf32>, vector<8x128xf32> -> vector<8x128xf32>
    %44 = arith.index_cast %40 : i32 to index
    %c0_33 = arith.constant 0 : index
    %45 = vector.load %arg9[%44, %c0_33] : memref<64x128xf32, #tpu.memory_space<vmem>>, vector<8x128xf32>
    %46 = arith.addf %43, %45 : vector<8x128xf32>
    %47 = arith.negf %46 : vector<8x128xf32>
    %48 = math.exp %47 : vector<8x128xf32>
    %cst_34 = arith.constant 1.000000e+00 : f32
    %49 = vector.broadcast %cst_34 : f32 to vector<8x128xf32>
    %50 = arith.addf %49, %48 : vector<8x128xf32>
    %51 = arith.divf %49, %50 : vector<8x128xf32>
    %52 = math.tanh %46 : vector<8x128xf32>
    %53 = vector.extract_strided_slice %51 {offsets = [0, 0], sizes = [8, 32], strides = [1, 1]} : vector<8x128xf32> to vector<8x32xf32>
    %54 = vector.extract_strided_slice %51 {offsets = [0, 32], sizes = [8, 32], strides = [1, 1]} : vector<8x128xf32> to vector<8x32xf32>
    %55 = vector.extract_strided_slice %52 {offsets = [0, 64], sizes = [8, 32], strides = [1, 1]} : vector<8x128xf32> to vector<8x32xf32>
    %56 = vector.extract_strided_slice %51 {offsets = [0, 96], sizes = [8, 32], strides = [1, 1]} : vector<8x128xf32> to vector<8x32xf32>
    %57 = arith.mulf %54, %42 : vector<8x32xf32>
    %58 = arith.mulf %53, %55 : vector<8x32xf32>
    %59 = arith.addf %57, %58 : vector<8x32xf32>
    %60 = math.tanh %59 : vector<8x32xf32>
    %61 = arith.mulf %56, %60 : vector<8x32xf32>
    %c0_35 = arith.constant 0 : index
    %c0_36 = arith.constant 0 : index
    %62 = vector.load %arg7[%c0_35, %c0_36] : memref<8x32xf32, #tpu.memory_space<vmem>>, vector<8x32xf32>
    tpu.vector_store %arg7[%c0_35, %c0_36], %61 {strides = array<i32>} : memref<8x32xf32, #tpu.memory_space<vmem>>, vector<8x32xf32>,
    %c0_37 = arith.constant 0 : index
    %c0_38 = arith.constant 0 : index
    %63 = vector.load %arg8[%c0_37, %c0_38] : memref<8x32xf32, #tpu.memory_space<vmem>>, vector<8x32xf32>
    tpu.vector_store %arg8[%c0_37, %c0_38], %59 {strides = array<i32>} : memref<8x32xf32, #tpu.memory_space<vmem>>, vector<8x32xf32>,
    %64 = arith.index_cast %40 : i32 to index
    %c0_39 = arith.constant 0 : index
    %65 = vector.load %arg10[%64, %c0_39] : memref<64x32xf32, #tpu.memory_space<vmem>>, vector<8x32xf32>
    tpu.vector_store %arg10[%64, %c0_39], %61 {strides = array<i32>} : memref<64x32xf32, #tpu.memory_space<vmem>>, vector<8x32xf32>,
    %c2_i32 = arith.constant 2 : i32
    %c8_i32_40 = arith.constant 8 : i32
    %66 = arith.muli %c2_i32, %c8_i32_40 : i32
    %67 = tpu.assume_multiple %66, 8 : i32
    %c0_41 = arith.constant 0 : index
    %c0_42 = arith.constant 0 : index
    %68 = vector.load %arg7[%c0_41, %c0_42] : memref<8x32xf32, #tpu.memory_space<vmem>>, vector<8x32xf32>
    %c0_43 = arith.constant 0 : index
    %c0_44 = arith.constant 0 : index
    %69 = vector.load %arg8[%c0_43, %c0_44] : memref<8x32xf32, #tpu.memory_space<vmem>>, vector<8x32xf32>
    %cst_45 = arith.constant dense<0.000000e+00> : vector<8x128xf32>
    %70 = tpu.matmul %68, %11, %cst_45 {dimension_numbers = #tpu.dot_dimension_numbers<[1], [0], [0], [1], [0, 0, 1, 1], [], []>} : vector<8x32xf32>, vector<32x128xf32>, vector<8x128xf32> -> vector<8x128xf32>
    %71 = arith.index_cast %67 : i32 to index
    %c0_46 = arith.constant 0 : index
    %72 = vector.load %arg9[%71, %c0_46] : memref<64x128xf32, #tpu.memory_space<vmem>>, vector<8x128xf32>
    %73 = arith.addf %70, %72 : vector<8x128xf32>
    %74 = arith.negf %73 : vector<8x128xf32>
    %75 = math.exp %74 : vector<8x128xf32>
    %cst_47 = arith.constant 1.000000e+00 : f32
    %76 = vector.broadcast %cst_47 : f32 to vector<8x128xf32>
    %77 = arith.addf %76, %75 : vector<8x128xf32>
    %78 = arith.divf %76, %77 : vector<8x128xf32>
    %79 = math.tanh %73 : vector<8x128xf32>
    %80 = vector.extract_strided_slice %78 {offsets = [0, 0], sizes = [8, 32], strides = [1, 1]} : vector<8x128xf32> to vector<8x32xf32>
    %81 = vector.extract_strided_slice %78 {offsets = [0, 32], sizes = [8, 32], strides = [1, 1]} : vector<8x128xf32> to vector<8x32xf32>
    %82 = vector.extract_strided_slice %79 {offsets = [0, 64], sizes = [8, 32], strides = [1, 1]} : vector<8x128xf32> to vector<8x32xf32>
    %83 = vector.extract_strided_slice %78 {offsets = [0, 96], sizes = [8, 32], strides = [1, 1]} : vector<8x128xf32> to vector<8x32xf32>
    %84 = arith.mulf %81, %69 : vector<8x32xf32>
    %85 = arith.mulf %80, %82 : vector<8x32xf32>
    %86 = arith.addf %84, %85 : vector<8x32xf32>
    %87 = math.tanh %86 : vector<8x32xf32>
    %88 = arith.mulf %83, %87 : vector<8x32xf32>
    %c0_48 = arith.constant 0 : index
    %c0_49 = arith.constant 0 : index
    %89 = vector.load %arg7[%c0_48, %c0_49] : memref<8x32xf32, #tpu.memory_space<vmem>>, vector<8x32xf32>
    tpu.vector_store %arg7[%c0_48, %c0_49], %88 {strides = array<i32>} : memref<8x32xf32, #tpu.memory_space<vmem>>, vector<8x32xf32>,
    %c0_50 = arith.constant 0 : index
    %c0_51 = arith.constant 0 : index
    %90 = vector.load %arg8[%c0_50, %c0_51] : memref<8x32xf32, #tpu.memory_space<vmem>>, vector<8x32xf32>
    tpu.vector_store %arg8[%c0_50, %c0_51], %86 {strides = array<i32>} : memref<8x32xf32, #tpu.memory_space<vmem>>, vector<8x32xf32>,
    %91 = arith.index_cast %67 : i32 to index
    %c0_52 = arith.constant 0 : index
    %92 = vector.load %arg10[%91, %c0_52] : memref<64x32xf32, #tpu.memory_space<vmem>>, vector<8x32xf32>
    tpu.vector_store %arg10[%91, %c0_52], %88 {strides = array<i32>} : memref<64x32xf32, #tpu.memory_space<vmem>>, vector<8x32xf32>,
    %c3_i32 = arith.constant 3 : i32
    %c8_i32_53 = arith.constant 8 : i32
    %93 = arith.muli %c3_i32, %c8_i32_53 : i32
    %94 = tpu.assume_multiple %93, 8 : i32
    %c0_54 = arith.constant 0 : index
    %c0_55 = arith.constant 0 : index
    %95 = vector.load %arg7[%c0_54, %c0_55] : memref<8x32xf32, #tpu.memory_space<vmem>>, vector<8x32xf32>
    %c0_56 = arith.constant 0 : index
    %c0_57 = arith.constant 0 : index
    %96 = vector.load %arg8[%c0_56, %c0_57] : memref<8x32xf32, #tpu.memory_space<vmem>>, vector<8x32xf32>
    %cst_58 = arith.constant dense<0.000000e+00> : vector<8x128xf32>
    %97 = tpu.matmul %95, %11, %cst_58 {dimension_numbers = #tpu.dot_dimension_numbers<[1], [0], [0], [1], [0, 0, 1, 1], [], []>} : vector<8x32xf32>, vector<32x128xf32>, vector<8x128xf32> -> vector<8x128xf32>
    %98 = arith.index_cast %94 : i32 to index
    %c0_59 = arith.constant 0 : index
    %99 = vector.load %arg9[%98, %c0_59] : memref<64x128xf32, #tpu.memory_space<vmem>>, vector<8x128xf32>
    %100 = arith.addf %97, %99 : vector<8x128xf32>
    %101 = arith.negf %100 : vector<8x128xf32>
    %102 = math.exp %101 : vector<8x128xf32>
    %cst_60 = arith.constant 1.000000e+00 : f32
    %103 = vector.broadcast %cst_60 : f32 to vector<8x128xf32>
    %104 = arith.addf %103, %102 : vector<8x128xf32>
    %105 = arith.divf %103, %104 : vector<8x128xf32>
    %106 = math.tanh %100 : vector<8x128xf32>
    %107 = vector.extract_strided_slice %105 {offsets = [0, 0], sizes = [8, 32], strides = [1, 1]} : vector<8x128xf32> to vector<8x32xf32>
    %108 = vector.extract_strided_slice %105 {offsets = [0, 32], sizes = [8, 32], strides = [1, 1]} : vector<8x128xf32> to vector<8x32xf32>
    %109 = vector.extract_strided_slice %106 {offsets = [0, 64], sizes = [8, 32], strides = [1, 1]} : vector<8x128xf32> to vector<8x32xf32>
    %110 = vector.extract_strided_slice %105 {offsets = [0, 96], sizes = [8, 32], strides = [1, 1]} : vector<8x128xf32> to vector<8x32xf32>
    %111 = arith.mulf %108, %96 : vector<8x32xf32>
    %112 = arith.mulf %107, %109 : vector<8x32xf32>
    %113 = arith.addf %111, %112 : vector<8x32xf32>
    %114 = math.tanh %113 : vector<8x32xf32>
    %115 = arith.mulf %110, %114 : vector<8x32xf32>
    %c0_61 = arith.constant 0 : index
    %c0_62 = arith.constant 0 : index
    %116 = vector.load %arg7[%c0_61, %c0_62] : memref<8x32xf32, #tpu.memory_space<vmem>>, vector<8x32xf32>
    tpu.vector_store %arg7[%c0_61, %c0_62], %115 {strides = array<i32>} : memref<8x32xf32, #tpu.memory_space<vmem>>, vector<8x32xf32>,
    %c0_63 = arith.constant 0 : index
    %c0_64 = arith.constant 0 : index
    %117 = vector.load %arg8[%c0_63, %c0_64] : memref<8x32xf32, #tpu.memory_space<vmem>>, vector<8x32xf32>
    tpu.vector_store %arg8[%c0_63, %c0_64], %113 {strides = array<i32>} : memref<8x32xf32, #tpu.memory_space<vmem>>, vector<8x32xf32>,
    %118 = arith.index_cast %94 : i32 to index
    %c0_65 = arith.constant 0 : index
    %119 = vector.load %arg10[%118, %c0_65] : memref<64x32xf32, #tpu.memory_space<vmem>>, vector<8x32xf32>
    tpu.vector_store %arg10[%118, %c0_65], %115 {strides = array<i32>} : memref<64x32xf32, #tpu.memory_space<vmem>>, vector<8x32xf32>,
    %c4_i32 = arith.constant 4 : i32
    %c8_i32_66 = arith.constant 8 : i32
    %120 = arith.muli %c4_i32, %c8_i32_66 : i32
    %121 = tpu.assume_multiple %120, 8 : i32
    %c0_67 = arith.constant 0 : index
    %c0_68 = arith.constant 0 : index
    %122 = vector.load %arg7[%c0_67, %c0_68] : memref<8x32xf32, #tpu.memory_space<vmem>>, vector<8x32xf32>
    %c0_69 = arith.constant 0 : index
    %c0_70 = arith.constant 0 : index
    %123 = vector.load %arg8[%c0_69, %c0_70] : memref<8x32xf32, #tpu.memory_space<vmem>>, vector<8x32xf32>
    %cst_71 = arith.constant dense<0.000000e+00> : vector<8x128xf32>
    %124 = tpu.matmul %122, %11, %cst_71 {dimension_numbers = #tpu.dot_dimension_numbers<[1], [0], [0], [1], [0, 0, 1, 1], [], []>} : vector<8x32xf32>, vector<32x128xf32>, vector<8x128xf32> -> vector<8x128xf32>
    %125 = arith.index_cast %121 : i32 to index
    %c0_72 = arith.constant 0 : index
    %126 = vector.load %arg9[%125, %c0_72] : memref<64x128xf32, #tpu.memory_space<vmem>>, vector<8x128xf32>
    %127 = arith.addf %124, %126 : vector<8x128xf32>
    %128 = arith.negf %127 : vector<8x128xf32>
    %129 = math.exp %128 : vector<8x128xf32>
    %cst_73 = arith.constant 1.000000e+00 : f32
    %130 = vector.broadcast %cst_73 : f32 to vector<8x128xf32>
    %131 = arith.addf %130, %129 : vector<8x128xf32>
    %132 = arith.divf %130, %131 : vector<8x128xf32>
    %133 = math.tanh %127 : vector<8x128xf32>
    %134 = vector.extract_strided_slice %132 {offsets = [0, 0], sizes = [8, 32], strides = [1, 1]} : vector<8x128xf32> to vector<8x32xf32>
    %135 = vector.extract_strided_slice %132 {offsets = [0, 32], sizes = [8, 32], strides = [1, 1]} : vector<8x128xf32> to vector<8x32xf32>
    %136 = vector.extract_strided_slice %133 {offsets = [0, 64], sizes = [8, 32], strides = [1, 1]} : vector<8x128xf32> to vector<8x32xf32>
    %137 = vector.extract_strided_slice %132 {offsets = [0, 96], sizes = [8, 32], strides = [1, 1]} : vector<8x128xf32> to vector<8x32xf32>
    %138 = arith.mulf %135, %123 : vector<8x32xf32>
    %139 = arith.mulf %134, %136 : vector<8x32xf32>
    %140 = arith.addf %138, %139 : vector<8x32xf32>
    %141 = math.tanh %140 : vector<8x32xf32>
    %142 = arith.mulf %137, %141 : vector<8x32xf32>
    %c0_74 = arith.constant 0 : index
    %c0_75 = arith.constant 0 : index
    %143 = vector.load %arg7[%c0_74, %c0_75] : memref<8x32xf32, #tpu.memory_space<vmem>>, vector<8x32xf32>
    tpu.vector_store %arg7[%c0_74, %c0_75], %142 {strides = array<i32>} : memref<8x32xf32, #tpu.memory_space<vmem>>, vector<8x32xf32>,
    %c0_76 = arith.constant 0 : index
    %c0_77 = arith.constant 0 : index
    %144 = vector.load %arg8[%c0_76, %c0_77] : memref<8x32xf32, #tpu.memory_space<vmem>>, vector<8x32xf32>
    tpu.vector_store %arg8[%c0_76, %c0_77], %140 {strides = array<i32>} : memref<8x32xf32, #tpu.memory_space<vmem>>, vector<8x32xf32>,
    %145 = arith.index_cast %121 : i32 to index
    %c0_78 = arith.constant 0 : index
    %146 = vector.load %arg10[%145, %c0_78] : memref<64x32xf32, #tpu.memory_space<vmem>>, vector<8x32xf32>
    tpu.vector_store %arg10[%145, %c0_78], %142 {strides = array<i32>} : memref<64x32xf32, #tpu.memory_space<vmem>>, vector<8x32xf32>,
    %c5_i32 = arith.constant 5 : i32
    %c8_i32_79 = arith.constant 8 : i32
    %147 = arith.muli %c5_i32, %c8_i32_79 : i32
    %148 = tpu.assume_multiple %147, 8 : i32
    %c0_80 = arith.constant 0 : index
    %c0_81 = arith.constant 0 : index
    %149 = vector.load %arg7[%c0_80, %c0_81] : memref<8x32xf32, #tpu.memory_space<vmem>>, vector<8x32xf32>
    %c0_82 = arith.constant 0 : index
    %c0_83 = arith.constant 0 : index
    %150 = vector.load %arg8[%c0_82, %c0_83] : memref<8x32xf32, #tpu.memory_space<vmem>>, vector<8x32xf32>
    %cst_84 = arith.constant dense<0.000000e+00> : vector<8x128xf32>
    %151 = tpu.matmul %149, %11, %cst_84 {dimension_numbers = #tpu.dot_dimension_numbers<[1], [0], [0], [1], [0, 0, 1, 1], [], []>} : vector<8x32xf32>, vector<32x128xf32>, vector<8x128xf32> -> vector<8x128xf32>
    %152 = arith.index_cast %148 : i32 to index
    %c0_85 = arith.constant 0 : index
    %153 = vector.load %arg9[%152, %c0_85] : memref<64x128xf32, #tpu.memory_space<vmem>>, vector<8x128xf32>
    %154 = arith.addf %151, %153 : vector<8x128xf32>
    %155 = arith.negf %154 : vector<8x128xf32>
    %156 = math.exp %155 : vector<8x128xf32>
    %cst_86 = arith.constant 1.000000e+00 : f32
    %157 = vector.broadcast %cst_86 : f32 to vector<8x128xf32>
    %158 = arith.addf %157, %156 : vector<8x128xf32>
    %159 = arith.divf %157, %158 : vector<8x128xf32>
    %160 = math.tanh %154 : vector<8x128xf32>
    %161 = vector.extract_strided_slice %159 {offsets = [0, 0], sizes = [8, 32], strides = [1, 1]} : vector<8x128xf32> to vector<8x32xf32>
    %162 = vector.extract_strided_slice %159 {offsets = [0, 32], sizes = [8, 32], strides = [1, 1]} : vector<8x128xf32> to vector<8x32xf32>
    %163 = vector.extract_strided_slice %160 {offsets = [0, 64], sizes = [8, 32], strides = [1, 1]} : vector<8x128xf32> to vector<8x32xf32>
    %164 = vector.extract_strided_slice %159 {offsets = [0, 96], sizes = [8, 32], strides = [1, 1]} : vector<8x128xf32> to vector<8x32xf32>
    %165 = arith.mulf %162, %150 : vector<8x32xf32>
    %166 = arith.mulf %161, %163 : vector<8x32xf32>
    %167 = arith.addf %165, %166 : vector<8x32xf32>
    %168 = math.tanh %167 : vector<8x32xf32>
    %169 = arith.mulf %164, %168 : vector<8x32xf32>
    %c0_87 = arith.constant 0 : index
    %c0_88 = arith.constant 0 : index
    %170 = vector.load %arg7[%c0_87, %c0_88] : memref<8x32xf32, #tpu.memory_space<vmem>>, vector<8x32xf32>
    tpu.vector_store %arg7[%c0_87, %c0_88], %169 {strides = array<i32>} : memref<8x32xf32, #tpu.memory_space<vmem>>, vector<8x32xf32>,
    %c0_89 = arith.constant 0 : index
    %c0_90 = arith.constant 0 : index
    %171 = vector.load %arg8[%c0_89, %c0_90] : memref<8x32xf32, #tpu.memory_space<vmem>>, vector<8x32xf32>
    tpu.vector_store %arg8[%c0_89, %c0_90], %167 {strides = array<i32>} : memref<8x32xf32, #tpu.memory_space<vmem>>, vector<8x32xf32>,
    %172 = arith.index_cast %148 : i32 to index
    %c0_91 = arith.constant 0 : index
    %173 = vector.load %arg10[%172, %c0_91] : memref<64x32xf32, #tpu.memory_space<vmem>>, vector<8x32xf32>
    tpu.vector_store %arg10[%172, %c0_91], %169 {strides = array<i32>} : memref<64x32xf32, #tpu.memory_space<vmem>>, vector<8x32xf32>,
    %c6_i32 = arith.constant 6 : i32
    %c8_i32_92 = arith.constant 8 : i32
    %174 = arith.muli %c6_i32, %c8_i32_92 : i32
    %175 = tpu.assume_multiple %174, 8 : i32
    %c0_93 = arith.constant 0 : index
    %c0_94 = arith.constant 0 : index
    %176 = vector.load %arg7[%c0_93, %c0_94] : memref<8x32xf32, #tpu.memory_space<vmem>>, vector<8x32xf32>
    %c0_95 = arith.constant 0 : index
    %c0_96 = arith.constant 0 : index
    %177 = vector.load %arg8[%c0_95, %c0_96] : memref<8x32xf32, #tpu.memory_space<vmem>>, vector<8x32xf32>
    %cst_97 = arith.constant dense<0.000000e+00> : vector<8x128xf32>
    %178 = tpu.matmul %176, %11, %cst_97 {dimension_numbers = #tpu.dot_dimension_numbers<[1], [0], [0], [1], [0, 0, 1, 1], [], []>} : vector<8x32xf32>, vector<32x128xf32>, vector<8x128xf32> -> vector<8x128xf32>
    %179 = arith.index_cast %175 : i32 to index
    %c0_98 = arith.constant 0 : index
    %180 = vector.load %arg9[%179, %c0_98] : memref<64x128xf32, #tpu.memory_space<vmem>>, vector<8x128xf32>
    %181 = arith.addf %178, %180 : vector<8x128xf32>
    %182 = arith.negf %181 : vector<8x128xf32>
    %183 = math.exp %182 : vector<8x128xf32>
    %cst_99 = arith.constant 1.000000e+00 : f32
    %184 = vector.broadcast %cst_99 : f32 to vector<8x128xf32>
    %185 = arith.addf %184, %183 : vector<8x128xf32>
    %186 = arith.divf %184, %185 : vector<8x128xf32>
    %187 = math.tanh %181 : vector<8x128xf32>
    %188 = vector.extract_strided_slice %186 {offsets = [0, 0], sizes = [8, 32], strides = [1, 1]} : vector<8x128xf32> to vector<8x32xf32>
    %189 = vector.extract_strided_slice %186 {offsets = [0, 32], sizes = [8, 32], strides = [1, 1]} : vector<8x128xf32> to vector<8x32xf32>
    %190 = vector.extract_strided_slice %187 {offsets = [0, 64], sizes = [8, 32], strides = [1, 1]} : vector<8x128xf32> to vector<8x32xf32>
    %191 = vector.extract_strided_slice %186 {offsets = [0, 96], sizes = [8, 32], strides = [1, 1]} : vector<8x128xf32> to vector<8x32xf32>
    %192 = arith.mulf %189, %177 : vector<8x32xf32>
    %193 = arith.mulf %188, %190 : vector<8x32xf32>
    %194 = arith.addf %192, %193 : vector<8x32xf32>
    %195 = math.tanh %194 : vector<8x32xf32>
    %196 = arith.mulf %191, %195 : vector<8x32xf32>
    %c0_100 = arith.constant 0 : index
    %c0_101 = arith.constant 0 : index
    %197 = vector.load %arg7[%c0_100, %c0_101] : memref<8x32xf32, #tpu.memory_space<vmem>>, vector<8x32xf32>
    tpu.vector_store %arg7[%c0_100, %c0_101], %196 {strides = array<i32>} : memref<8x32xf32, #tpu.memory_space<vmem>>, vector<8x32xf32>,
    %c0_102 = arith.constant 0 : index
    %c0_103 = arith.constant 0 : index
    %198 = vector.load %arg8[%c0_102, %c0_103] : memref<8x32xf32, #tpu.memory_space<vmem>>, vector<8x32xf32>
    tpu.vector_store %arg8[%c0_102, %c0_103], %194 {strides = array<i32>} : memref<8x32xf32, #tpu.memory_space<vmem>>, vector<8x32xf32>,
    %199 = arith.index_cast %175 : i32 to index
    %c0_104 = arith.constant 0 : index
    %200 = vector.load %arg10[%199, %c0_104] : memref<64x32xf32, #tpu.memory_space<vmem>>, vector<8x32xf32>
    tpu.vector_store %arg10[%199, %c0_104], %196 {strides = array<i32>} : memref<64x32xf32, #tpu.memory_space<vmem>>, vector<8x32xf32>,
    %c7_i32 = arith.constant 7 : i32
    %c8_i32_105 = arith.constant 8 : i32
    %201 = arith.muli %c7_i32, %c8_i32_105 : i32
    %202 = tpu.assume_multiple %201, 8 : i32
    %c0_106 = arith.constant 0 : index
    %c0_107 = arith.constant 0 : index
    %203 = vector.load %arg7[%c0_106, %c0_107] : memref<8x32xf32, #tpu.memory_space<vmem>>, vector<8x32xf32>
    %c0_108 = arith.constant 0 : index
    %c0_109 = arith.constant 0 : index
    %204 = vector.load %arg8[%c0_108, %c0_109] : memref<8x32xf32, #tpu.memory_space<vmem>>, vector<8x32xf32>
    %cst_110 = arith.constant dense<0.000000e+00> : vector<8x128xf32>
    %205 = tpu.matmul %203, %11, %cst_110 {dimension_numbers = #tpu.dot_dimension_numbers<[1], [0], [0], [1], [0, 0, 1, 1], [], []>} : vector<8x32xf32>, vector<32x128xf32>, vector<8x128xf32> -> vector<8x128xf32>
    %206 = arith.index_cast %202 : i32 to index
    %c0_111 = arith.constant 0 : index
    %207 = vector.load %arg9[%206, %c0_111] : memref<64x128xf32, #tpu.memory_space<vmem>>, vector<8x128xf32>
    %208 = arith.addf %205, %207 : vector<8x128xf32>
    %209 = arith.negf %208 : vector<8x128xf32>
    %210 = math.exp %209 : vector<8x128xf32>
    %cst_112 = arith.constant 1.000000e+00 : f32
    %211 = vector.broadcast %cst_112 : f32 to vector<8x128xf32>
    %212 = arith.addf %211, %210 : vector<8x128xf32>
    %213 = arith.divf %211, %212 : vector<8x128xf32>
    %214 = math.tanh %208 : vector<8x128xf32>
    %215 = vector.extract_strided_slice %213 {offsets = [0, 0], sizes = [8, 32], strides = [1, 1]} : vector<8x128xf32> to vector<8x32xf32>
    %216 = vector.extract_strided_slice %213 {offsets = [0, 32], sizes = [8, 32], strides = [1, 1]} : vector<8x128xf32> to vector<8x32xf32>
    %217 = vector.extract_strided_slice %214 {offsets = [0, 64], sizes = [8, 32], strides = [1, 1]} : vector<8x128xf32> to vector<8x32xf32>
    %218 = vector.extract_strided_slice %213 {offsets = [0, 96], sizes = [8, 32], strides = [1, 1]} : vector<8x128xf32> to vector<8x32xf32>
    %219 = arith.mulf %216, %204 : vector<8x32xf32>
    %220 = arith.mulf %215, %217 : vector<8x32xf32>
    %221 = arith.addf %219, %220 : vector<8x32xf32>
    %222 = math.tanh %221 : vector<8x32xf32>
    %223 = arith.mulf %218, %222 : vector<8x32xf32>
    %c0_113 = arith.constant 0 : index
    %c0_114 = arith.constant 0 : index
    %224 = vector.load %arg7[%c0_113, %c0_114] : memref<8x32xf32, #tpu.memory_space<vmem>>, vector<8x32xf32>
    tpu.vector_store %arg7[%c0_113, %c0_114], %223 {strides = array<i32>} : memref<8x32xf32, #tpu.memory_space<vmem>>, vector<8x32xf32>,
    %c0_115 = arith.constant 0 : index
    %c0_116 = arith.constant 0 : index
    %225 = vector.load %arg8[%c0_115, %c0_116] : memref<8x32xf32, #tpu.memory_space<vmem>>, vector<8x32xf32>
    tpu.vector_store %arg8[%c0_115, %c0_116], %221 {strides = array<i32>} : memref<8x32xf32, #tpu.memory_space<vmem>>, vector<8x32xf32>,
    %226 = arith.index_cast %202 : i32 to index
    %c0_117 = arith.constant 0 : index
    %227 = vector.load %arg10[%226, %c0_117] : memref<64x32xf32, #tpu.memory_space<vmem>>, vector<8x32xf32>
    tpu.vector_store %arg10[%226, %c0_117], %223 {strides = array<i32>} : memref<64x32xf32, #tpu.memory_space<vmem>>, vector<8x32xf32>,
    %c8_i32_118 = arith.constant 8 : i32
    %c0_119 = arith.constant 0 : index
    %c0_120 = arith.constant 0 : index
    %228 = vector.load %arg10[%c0_119, %c0_120] : memref<64x32xf32, #tpu.memory_space<vmem>>, vector<64x32xf32>
    %c0_121 = arith.constant 0 : index
    %c0_122 = arith.constant 0 : index
    %229 = vector.load %arg4[%c0_121, %c0_122] : memref<32x1xf32, #tpu.memory_space<vmem>>, vector<32x1xf32>
    %cst_123 = arith.constant dense<0.000000e+00> : vector<64x1xf32>
    %230 = tpu.matmul %228, %229, %cst_123 {dimension_numbers = #tpu.dot_dimension_numbers<[1], [0], [0], [1], [0, 0, 1, 1], [], []>} : vector<64x32xf32>, vector<32x1xf32>, vector<64x1xf32> -> vector<64x1xf32>
    %c0_124 = arith.constant 0 : index
    %c0_125 = arith.constant 0 : index
    %231 = vector.load %arg5[%c0_124, %c0_125] : memref<1x1xf32, #tpu.memory_space<vmem>>, vector<1x1xf32>
    %232 = vector.broadcast %231 : vector<1x1xf32> to vector<64x1xf32>
    %233 = arith.addf %230, %232 : vector<64x1xf32>
    %c0_126 = arith.constant 0 : index
    %c0_127 = arith.constant 0 : index
    %234 = vector.load %arg6[%c0_126, %c0_127] : memref<64x1xf32, #tpu.memory_space<vmem>>, vector<64x1xf32>
    tpu.vector_store %arg6[%c0_126, %c0_127], %233 {strides = array<i32>} : memref<64x1xf32, #tpu.memory_space<vmem>>, vector<64x1xf32>,
    return
  }
}

</mosaic_0001>

<bundles_post_ra>
// kernel: tpu_custom_call.1
= control target key start
LH: loop header
LB: loop body
LE: loop exit
PB: predicated region body
PF: predicated region fallthrough
CT: control target
= control target key end

     0   :  { %vm66_vm0 = vcmask 1040384   ;;  %vm41_vm1 = vcmask 7168   ;;  %vm183_vm2 = vcmask 261120   ;;  %v1630_v6 = vmov 0.0   ;;  %s1633_s19 = smov 64   ;;  %s1634_s20 = smov 32   ;;  %s1948_s1 = inlined_call_operand.vmem [shape: f32[1,128], index: 1, kind: input, shape index: {}]   ;;  %s1949_s0 = inlined_call_operand.vmem [shape: f32[64,1], index: 0, kind: input, shape index: {}]   ;;  %s1950_s2 = inlined_call_operand.vmem [shape: f32[32,128], index: 2, kind: input, shape index: {}]   ;;  %s1951_s3 = inlined_call_operand.vmem [shape: f32[1,128], index: 3, kind: input, shape index: {}]   ;;  %s1952_s4 = inlined_call_operand.vmem [shape: f32[32,1], index: 4, kind: input, shape index: {}]   ;;  %s1953_s5 = inlined_call_operand.<no memory space> [shape: f32[1,1], index: 5, kind: input, shape index: {}]   ;;  %s1954_s6 = inlined_call_operand.vmem [shape: f32[64,1], index: 6, kind: output, shape index: {}]  }
   0x1   :  { %v33_v0 = vld [vmem:[%s1948_s1] sm:$0x1]  ;;  %v30_v2 = vld [vmem:[%s1949_s0 + $0x28] sm:$0xff]  ;;  %v31_v5 = vld [vmem:[%s1949_s0 + $0x30] sm:$0xff]  ;;  %184 = vst.msk [vmem:[#allocation2] sm:$0xff] %vm183_vm2, %v1630_v6  ;;  %v1631_v9 = vmov 0.0|0.0  }
   0x2   :  { %v29_v1 = vld [vmem:[%s1949_s0 + $0x20] sm:$0xff]  ;;  %1558 = vmatprep.subr.msk.mxu1 %vm66_vm0, %v33_v0  ;;  %v187_v4 = vld [vmem:[%s1950_s2 + $0x8] sm:$0xff]  ;;  %185 = vst.msk [vmem:[#allocation3] sm:$0xff] %vm183_vm2, %v1630_v6  ;;  %1380 = vmatprep.subr.msk.mxu0 %vm66_vm0, %v33_v0  ;;  %v188_v11 = vld [vmem:[%s1950_s2 + $0x10] sm:$0xff]  ;;  %vm1632_vm3 = vmmov 0  }
   0x3   :  { %1388 = vmatprep.mubr.msk.f32.mxu1 %vm41_vm1, %v29_v1  ;;  %v186_v3 = vld [vmem:[%s1950_s2] sm:$0xff]  ;;  %1559 = vmatpush3.msk.msra.mxu1 %vm66_vm0, %v33_v0  ;;  %v26_v10 = vld [vmem:[%s1949_s0 + $0x8] sm:$0xff]  ;;  %v189_v12 = vld [vmem:[%s1950_s2 + $0x18] sm:$0xff] }
   0x4   :  { %v1696_v7 = vpack.c.bf16 %v187_v4, %v186_v3  ;;  %v25_v8 = vld [vmem:[%s1949_s0] sm:$0xff]  ;;  %1389 = vmatmul.mubr.msk.f32.vlgmr.msra.gmra.mrb[0].mxu1 %vm41_vm1, %v30_v2  ;;  %1502 = vmatprep.subr.bf16.mxu1 %v1631_v9  ;;  %v32_v13 = vld [vmem:[%s1949_s0 + $0x38] sm:$0xff]  ;;  %v1718_v14 = vpack.c.bf16 %v189_v12, %v188_v11  ;;  %v27_v62 = vld [vmem:[%s1949_s0 + $0x10] sm:$0xff] }
   0x5   :  { %1391 = vmatprep.mubr.msk.f32.mxu1 %vm41_vm1, %v31_v5  ;;  %1381 = vmatpush3.msk.msra.mxu0 %vm66_vm0, %v33_v0  ;;  %v1748_v19 = vld [vmem:[%s1951_s3] ss:$0 sm:$0xff]  ;;  %s1635_s3 = smov 96   ;;  %v28_v63 = vld [vmem:[%s1949_s0 + $0x18] sm:$0xff] }
   0x6   :  { %1504 = vmatpush3.bf16.msra.mxu1 %v1696_v7  ;;  %1382 = vmatprep.mubr.msk.f32.mxu0 %vm41_vm1, %v25_v8 }
   0x7   :  { %1505 = vmatprep.subr.bf16.mxu1 %v1631_v9  ;;  %1383 = vmatmul.mubr.msk.f32.vlgmr.msra.gmra.mrb[0].mxu0 %vm41_vm1, %v26_v10 }
   0x8   :  { %1392 = vmatmul.mubr.msk.f32.gmra.mrb[2].mxu1 %vm41_vm1, %v32_v13  ;;  %1514 = vmatprep.subr.bf16.mxu0 %v1631_v9  ;;  %v190_v15 = vld [vmem:[#allocation2] sm:$0xff] }
   0x9   :  { %1402 = vmatprep.mubr.msk.f32.mxu1 %vm1632_vm3, %v1630_v6  ;;  %1516 = vmatpush3.bf16.msra.mxu0 %v1696_v7  ;;  %v191_v28 = vld [vmem:[#allocation3] sm:$0xff] }
   0xa   :  { %1507 = vmatpush3.bf16.msra.mxu1 %v1718_v14  ;;  %1517 = vmatprep.subr.bf16.mxu0 %v1631_v9 }
   0xb   :  { %1508 = vmatprep.subr.bf16.mxu1 %v1631_v9  ;;  %1385 = vmatprep.mubr.msk.f32.mxu0 %vm41_vm1, %v27_v62 }
   0xc   :  { %1386 = vmatmul.mubr.msk.f32.gmra.mrb[2].mxu0 %vm41_vm1, %v28_v63 }
   0xd   :  { %1403 = vmatmul.mubr.msk.f32.vlgmr.msra.gmra.mrb[4].mxu1 %vm183_vm2, %v190_v15  ;;  %1519 = vmatpush3.bf16.msra.mxu0 %v1718_v14 }
   0xe   :  { %1510 = vmatpush3.bf16.msra.mxu1 %v1696_v7  ;;  %1413 = vmatprep.mubr.msk.f32.mxu1 %vm1632_vm3, %v1630_v6 }
   0xf   :  { %1511 = vmatprep.subr.bf16.mxu1 %v1631_v9  ;;  %1526 = vmatprep.subr.bf16.mxu0 %v1631_v9 }
  0x10   :  { %1424 = vmatprep.mubr.msk.f32.mxu0 %vm1632_vm3, %v1630_v6 }
  0x12   :  { %1513 = vmatpush3.bf16.msra.mxu1 %v1718_v14 }
  0x13   :  { %1520 = vmatprep.subr.bf16.mxu1 %v1631_v9 }
  0xd7   :  { %v1741_v16 = vpop.f32.mrb[0].mxu1 }
  0xd8   :  { %v1743_v17 = vpop.f32.mrb[1].mxu1 }
  0xda   :  { %v1384_v18 = vpop.f32.mrb[0].mxu0 }
  0xdb   :  { %v1750_v20 = vpop.f32.mrb[2].mxu1  ;;  %v136_v21 = vpop.f32.mrb[1].mxu0  ;;  %v142_v46 = vadd.f32 %v1384_v18, %v1748_v19 }
  0xdc   :  { %v1752_v22 = vpop.f32.mrb[3].mxu1  ;;  %v137_v23 = vadd.f32 %v1748_v19, %v136_v21 }
  0xdf   :  { %v1387_v8 = vpop.f32.mrb[2].mxu0 }
  0xe0   :  { %v262_v24 = vpop.f32.mrb[4].mxu1  ;;  %v146_v10 = vpop.f32.mrb[3].mxu0 }
  0xe1   :  { %v263_v25 = vadd.f32 %v262_v24, %v137_v23  ;;  %v1404_v26 = vpop.f32.mrb[5].mxu1  ;;  %v147_v11 = vadd.f32 %v1748_v19, %v146_v10 }
  0xe3   :  { %1566 = vtanh.f32 %v263_v25  ;;  %v1295_v29 = vmul.f32 -1.442695, %v263_v25 }
  0xe5   :  { %1568 = vpow2.f32 %v1295_v29 }
  0xed   :  { %v1567_v27 = vpop.eup %1566 }
  0xee   :  { %279 = vrot.lane.b32.xlu0 %v1567_v27, %s1633_s19 }
  0xef   :  { %v1569_v30 = vpop.eup %1568 }
  0xf0   :  { %v269_v31 = vadd.f32 1.0, %v1569_v30 }
  0xf2   :  { %274 = vrot.lane.b32.xlu0 %v191_v28, %s1634_s20  ;;  %1570 = vrcp.f32 %v269_v31 }
  0xfc   :  { %v1571_v32 = vpop.eup %1570 }
 0x160   :  { %v280_v33 = vpop.permute.xlu0 %279 }
 0x161   :  { %v282_v34 = vmul.f32 %v1571_v32, %v280_v33 }
 0x163   :  { %284 = vrot.lane.b32.xlu1 %v282_v34, %s1634_s20 }
 0x164   :  { %v275_v35 = vpop.permute.xlu0 %274 }
 0x165   :  { %v277_v36 = vmul.f32 %v1571_v32, %v275_v35 }
 0x1d5   :  { %v285_v37 = vpop.permute.xlu1 %284 }
 0x1d6   :  { %v287_v38 = vadd.f32 %v285_v37, %v277_v36 }
 0x1d8   :  { %1572 = vtanh.f32 %v287_v38 }
 0x1e2   :  { %v1573_v39 = vpop.eup %1572 }
 0x1e3   :  { %290 = vrot.lane.b32.xlu1 %v1573_v39, %s1633_s19  ;;  %v152_v39 = vadd.f32 %v1387_v8, %v1748_v19 }
 0x1e7   :  { %300 = vrot.lane.b32.xlu1 %v287_v38, %s1635_s3 }
 0x255   :  { %v291_v40 = vpop.permute.xlu1 %290 }
 0x256   :  { %v293_v41 = vmul.f32 %v1571_v32, %v291_v40 }
 0x258   :  { %295 = vrot.lane.b32.xlu0 %v293_v41, %s1634_s20 }
 0x259   :  { %v301_v42 = vpop.permute.xlu1 %300 }
 0x25a   :  { %303 = vst.msk [vmem:[#allocation3] sm:$0xff] %vm183_vm2, %v301_v42 }
 0x261   :  { %v306_v43 = vld [vmem:[#allocation3] sm:$0xff] }
 0x262   :  { %390 = vrot.lane.b32.xlu1 %v306_v43, %s1634_s20 }
 0x2ca   :  { %v296_v44 = vpop.permute.xlu0 %295 }
 0x2cb   :  { %298 = vst.msk [vmem:[#allocation2] sm:$0xff] %vm183_vm2, %v296_v44  ;;  %304 = vst.msk [vmem:[#allocation5] sm:$0xff] %vm183_vm2, %v296_v44 }
 0x2d2   :  { %v305_v45 = vld [vmem:[#allocation2] sm:$0xff] }
 0x2d3   :  { %1414 = vmatmul.mubr.msk.f32.vlgmr.msra.gmra.mrb[6].mxu1 %vm183_vm2, %v305_v45 }
 0x2d4   :  { %1522 = vmatpush3.bf16.msra.mxu1 %v1696_v7  ;;  %1435 = vmatprep.mubr.msk.f32.mxu1 %vm1632_vm3, %v1630_v6  ;;  %v391_v57 = vpop.permute.xlu1 %390 }
 0x2d5   :  { %1523 = vmatprep.subr.bf16.mxu1 %v1631_v9 }
 0x2d8   :  { %1525 = vmatpush3.bf16.msra.mxu1 %v1718_v14 }
 0x2d9   :  { %1532 = vmatprep.subr.bf16.mxu1 %v1631_v9 }
 0x3a6   :  { %v378_v47 = vpop.f32.mrb[6].mxu1 }
 0x3a7   :  { %v379_v48 = vadd.f32 %v378_v47, %v142_v46  ;;  %v1415_v49 = vpop.f32.mrb[7].mxu1 }
 0x3a9   :  { %1574 = vtanh.f32 %v379_v48  ;;  %v1297_v51 = vmul.f32 -1.442695, %v379_v48 }
 0x3ab   :  { %1576 = vpow2.f32 %v1297_v51 }
 0x3b3   :  { %v1575_v50 = vpop.eup %1574 }
 0x3b4   :  { %395 = vrot.lane.b32.xlu0 %v1575_v50, %s1633_s19 }
 0x3b5   :  { %v1577_v52 = vpop.eup %1576 }
 0x3b6   :  { %v385_v53 = vadd.f32 1.0, %v1577_v52 }
 0x3b8   :  { %1578 = vrcp.f32 %v385_v53 }
 0x3c2   :  { %v1579_v54 = vpop.eup %1578 }
 0x3c3   :  { %v393_v58 = vmul.f32 %v1579_v54, %v391_v57 }
 0x426   :  { %v396_v55 = vpop.permute.xlu0 %395 }
 0x427   :  { %v398_v56 = vmul.f32 %v1579_v54, %v396_v55 }
 0x429   :  { %400 = vrot.lane.b32.xlu0 %v398_v56, %s1634_s20 }
 0x49b   :  { %v401_v59 = vpop.permute.xlu0 %400 }
 0x49c   :  { %v403_v60 = vadd.f32 %v401_v59, %v393_v58 }
 0x49e   :  { %1580 = vtanh.f32 %v403_v60 }
 0x4a8   :  { %v1581_v61 = vpop.eup %1580 }
 0x4a9   :  { %406 = vrot.lane.b32.xlu1 %v1581_v61, %s1633_s19  ;;  %v157_v61 = vadd.f32 %v1748_v19, %v1743_v17 }
 0x4ad   :  { %416 = vrot.lane.b32.xlu1 %v403_v60, %s1635_s3 }
 0x51b   :  { %v407_v0 = vpop.permute.xlu1 %406 }
 0x51c   :  { %v409_v1 = vmul.f32 %v1579_v54, %v407_v0 }
 0x51e   :  { %411 = vrot.lane.b32.xlu0 %v409_v1, %s1634_s20 }
 0x51f   :  { %v417_v2 = vpop.permute.xlu1 %416 }
 0x520   :  { %419 = vst.msk [vmem:[#allocation3] sm:$0xff] %vm183_vm2, %v417_v2 }
 0x527   :  { %v423_v3 = vld [vmem:[#allocation3] sm:$0xff] }
 0x528   :  { %507 = vrot.lane.b32.xlu1 %v423_v3, %s1634_s20 }
 0x590   :  { %v412_v4 = vpop.permute.xlu0 %411 }
 0x591   :  { %414 = vst.msk [vmem:[#allocation2] sm:$0xff] %vm183_vm2, %v412_v4  ;;  %421 = vst.msk [vmem:[#allocation5 + $0x8] sm:$0xff] %vm183_vm2, %v412_v4 }
 0x598   :  { %v422_v5 = vld [vmem:[#allocation2] sm:$0xff] }
 0x599   :  { %1425 = vmatmul.mubr.msk.f32.vlgmr.msra.gmra.mrb[4].mxu0 %vm183_vm2, %v422_v5 }
 0x59a   :  { %1528 = vmatpush3.bf16.msra.mxu0 %v1696_v7  ;;  %1446 = vmatprep.mubr.msk.f32.mxu0 %vm1632_vm3, %v1630_v6  ;;  %v508_v28 = vpop.permute.xlu1 %507 }
 0x59b   :  { %1529 = vmatprep.subr.bf16.mxu0 %v1631_v9 }
 0x59e   :  { %1531 = vmatpush3.bf16.msra.mxu0 %v1718_v14 }
 0x59f   :  { %1538 = vmatprep.subr.bf16.mxu0 %v1631_v9 }
 0x66c   :  { %v495_v12 = vpop.f32.mrb[4].mxu0 }
 0x66d   :  { %v496_v13 = vadd.f32 %v495_v12, %v147_v11  ;;  %v1426_v15 = vpop.f32.mrb[5].mxu0 }
 0x66f   :  { %1582 = vtanh.f32 %v496_v13  ;;  %v1299_v21 = vmul.f32 -1.442695, %v496_v13 }
 0x671   :  { %1584 = vpow2.f32 %v1299_v21 }
 0x679   :  { %v1583_v18 = vpop.eup %1582 }
 0x67a   :  { %512 = vrot.lane.b32.xlu0 %v1583_v18, %s1633_s19 }
 0x67b   :  { %v1585_v23 = vpop.eup %1584 }
 0x67c   :  { %v502_v24 = vadd.f32 1.0, %v1585_v23 }
 0x67e   :  { %1586 = vrcp.f32 %v502_v24 }
 0x688   :  { %v1587_v25 = vpop.eup %1586 }
 0x689   :  { %v510_v29 = vmul.f32 %v1587_v25, %v508_v28 }
 0x6ec   :  { %v513_v26 = vpop.permute.xlu0 %512 }
 0x6ed   :  { %v515_v27 = vmul.f32 %v1587_v25, %v513_v26 }
 0x6ef   :  { %517 = vrot.lane.b32.xlu0 %v515_v27, %s1634_s20  ;;  %v162_v27 = vadd.f32 %v1741_v16, %v1748_v19 }
 0x761   :  { %v518_v30 = vpop.permute.xlu0 %517 }
 0x762   :  { %v520_v31 = vadd.f32 %v518_v30, %v510_v29 }
 0x764   :  { %1588 = vtanh.f32 %v520_v31 }
 0x76e   :  { %v1589_v32 = vpop.eup %1588 }
 0x76f   :  { %523 = vrot.lane.b32.xlu1 %v1589_v32, %s1633_s19 }
 0x773   :  { %533 = vrot.lane.b32.xlu1 %v520_v31, %s1635_s3 }
 0x7e1   :  { %v524_v33 = vpop.permute.xlu1 %523 }
 0x7e2   :  { %v526_v34 = vmul.f32 %v1587_v25, %v524_v33 }
 0x7e4   :  { %528 = vrot.lane.b32.xlu0 %v526_v34, %s1634_s20 }
 0x7e5   :  { %v534_v35 = vpop.permute.xlu1 %533 }
 0x7e6   :  { %536 = vst.msk [vmem:[#allocation3] sm:$0xff] %vm183_vm2, %v534_v35 }
 0x7ed   :  { %v540_v36 = vld [vmem:[#allocation3] sm:$0xff] }
 0x7ee   :  { %624 = vrot.lane.b32.xlu1 %v540_v36, %s1634_s20 }
 0x856   :  { %v529_v37 = vpop.permute.xlu0 %528 }
 0x857   :  { %531 = vst.msk [vmem:[#allocation2] sm:$0xff] %vm183_vm2, %v529_v37  ;;  %538 = vst.msk [vmem:[#allocation5 + $0x10] sm:$0xff] %vm183_vm2, %v529_v37 }
 0x85e   :  { %v539_v38 = vld [vmem:[#allocation2] sm:$0xff] }
 0x85f   :  { %1436 = vmatmul.mubr.msk.f32.vlgmr.msra.gmra.mrb[8].mxu1 %vm183_vm2, %v539_v38  ;;  %v1132_v38 = vld [vmem:[%s1952_s4] sm:$0xff] }
 0x860   :  { %1534 = vmatpush3.bf16.msra.mxu1 %v1696_v7  ;;  %1457 = vmatprep.mubr.msk.f32.mxu1 %vm1632_vm3, %v1630_v6  ;;  %v625_v50 = vpop.permute.xlu1 %624 }
 0x861   :  { %1535 = vmatprep.subr.bf16.mxu1 %v1631_v9 }
 0x864   :  { %1537 = vmatpush3.bf16.msra.mxu1 %v1718_v14 }
 0x865   :  { %1544 = vmatprep.subr.bf16.mxu1 %v1631_v9 }
 0x932   :  { %v612_v40 = vpop.f32.mrb[8].mxu1 }
 0x933   :  { %v613_v41 = vadd.f32 %v612_v40, %v152_v39  ;;  %v1437_v42 = vpop.f32.mrb[9].mxu1  ;;  %v1133_v39 = vld [vmem:[%s1952_s4 + $0x8] sm:$0xff] }
 0x934   :  { %v1550_v40 = vpack.c.bf16 %v1133_v39, %v1132_v38 }
 0x935   :  { %1590 = vtanh.f32 %v613_v41  ;;  %v1301_v44 = vmul.f32 -1.442695, %v613_v41 }
 0x937   :  { %1592 = vpow2.f32 %v1301_v44 }
 0x93f   :  { %v1591_v43 = vpop.eup %1590 }
 0x940   :  { %629 = vrot.lane.b32.xlu0 %v1591_v43, %s1633_s19 }
 0x941   :  { %v1593_v45 = vpop.eup %1592 }
 0x942   :  { %v619_v46 = vadd.f32 1.0, %v1593_v45 }
 0x944   :  { %1594 = vrcp.f32 %v619_v46  ;;  %v1134_v46 = vld [vmem:[%s1952_s4 + $0x10] sm:$0xff] }
 0x94e   :  { %v1595_v47 = vpop.eup %1594 }
 0x94f   :  { %v627_v51 = vmul.f32 %v1595_v47, %v625_v50  ;;  %v1124_v50 = vld [vmem:[#allocation5] sm:$0xff] }
 0x9b2   :  { %v630_v48 = vpop.permute.xlu0 %629 }
 0x9b3   :  { %v632_v49 = vmul.f32 %v1595_v47, %v630_v48 }
 0x9b5   :  { %634 = vrot.lane.b32.xlu0 %v632_v49, %s1634_s20 }
 0xa27   :  { %v635_v52 = vpop.permute.xlu0 %634 }
 0xa28   :  { %v637_v53 = vadd.f32 %v635_v52, %v627_v51  ;;  %v1125_v51 = vld [vmem:[#allocation5 + $0x8] sm:$0xff]  ;;  %v1126_v52 = vld [vmem:[#allocation5 + $0x10] sm:$0xff] }
 0xa2a   :  { %1596 = vtanh.f32 %v637_v53 }
 0xa34   :  { %v1597_v54 = vpop.eup %1596 }
 0xa35   :  { %640 = vrot.lane.b32.xlu1 %v1597_v54, %s1633_s19 }
 0xa39   :  { %650 = vrot.lane.b32.xlu1 %v637_v53, %s1635_s3 }
 0xaa7   :  { %v641_v55 = vpop.permute.xlu1 %640 }
 0xaa8   :  { %v643_v56 = vmul.f32 %v1595_v47, %v641_v55  ;;  %v1135_v47 = vld [vmem:[%s1952_s4 + $0x18] sm:$0xff] }
 0xaa9   :  { %v1554_v48 = vpack.c.bf16 %v1135_v47, %v1134_v46 }
 0xaaa   :  { %645 = vrot.lane.b32.xlu0 %v643_v56, %s1634_s20  ;;  %v11_v56 = vstv %s1953_s5 }
 0xaab   :  { %v651_v57 = vpop.permute.xlu1 %650  ;;  %12 = vst [vmem:[#allocation6] sm:$0x1] %v11_v56 }
 0xaac   :  { %653 = vst.msk [vmem:[#allocation3] sm:$0xff] %vm183_vm2, %v651_v57  ;;  %v167_v57 = vadd.f32 %v1748_v19, %v1752_v22 }
 0xab3   :  { %v657_v58 = vld [vmem:[#allocation3] sm:$0xff] }
 0xab4   :  { %741 = vrot.lane.b32.xlu1 %v657_v58, %s1634_s20 }
 0xb1c   :  { %v646_v59 = vpop.permute.xlu0 %645 }
 0xb1d   :  { %648 = vst.msk [vmem:[#allocation2] sm:$0xff] %vm183_vm2, %v646_v59  ;;  %655 = vst.msk [vmem:[#allocation5 + $0x18] sm:$0xff] %vm183_vm2, %v646_v59 }
 0xb24   :  { %v656_v60 = vld [vmem:[#allocation2] sm:$0xff]  ;;  %v1127_v53 = vld [vmem:[#allocation5 + $0x18] sm:$0xff] }
 0xb25   :  { %1447 = vmatmul.mubr.msk.f32.vlgmr.msra.gmra.mrb[6].mxu0 %vm183_vm2, %v656_v60 }
 0xb26   :  { %1540 = vmatpush3.bf16.msra.mxu0 %v1696_v7  ;;  %1468 = vmatprep.mubr.msk.f32.mxu0 %vm1632_vm3, %v1630_v6  ;;  %v742_v11 = vpop.permute.xlu1 %741 }
 0xb27   :  { %1541 = vmatprep.subr.bf16.mxu0 %v1631_v9 }
 0xb2a   :  { %1543 = vmatpush3.bf16.msra.mxu0 %v1718_v14 }
 0xb2b   :  { %1551 = vmatprep.subr.bf16.mxu0 %v1550_v40 }
 0xbf8   :  { %v729_v62 = vpop.f32.mrb[6].mxu0 }
 0xbf9   :  { %v730_v63 = vadd.f32 %v729_v62, %v157_v61  ;;  %v1448_v0 = vpop.f32.mrb[7].mxu0  ;;  %v1884_v61 = vld [vmem:[#allocation6] ss:$0 sm:$0xff] }
 0xbfb   :  { %1598 = vtanh.f32 %v730_v63  ;;  %v1303_v2 = vmul.f32 -1.442695, %v730_v63 }
 0xbfd   :  { %1600 = vpow2.f32 %v1303_v2 }
 0xc05   :  { %v1599_v1 = vpop.eup %1598 }
 0xc06   :  { %746 = vrot.lane.b32.xlu0 %v1599_v1, %s1633_s19 }
 0xc07   :  { %v1601_v3 = vpop.eup %1600 }
 0xc08   :  { %v736_v4 = vadd.f32 1.0, %v1601_v3 }
 0xc0a   :  { %1602 = vrcp.f32 %v736_v4 }
 0xc14   :  { %v1603_v5 = vpop.eup %1602 }
 0xc15   :  { %v744_v12 = vmul.f32 %v1603_v5, %v742_v11 }
 0xc78   :  { %v747_v8 = vpop.permute.xlu0 %746 }
 0xc79   :  { %v749_v10 = vmul.f32 %v1603_v5, %v747_v8 }
 0xc7b   :  { %751 = vrot.lane.b32.xlu0 %v749_v10, %s1634_s20 }
 0xced   :  { %v752_v17 = vpop.permute.xlu0 %751 }
 0xcee   :  { %v754_v13 = vadd.f32 %v752_v17, %v744_v12 }
 0xcf0   :  { %1604 = vtanh.f32 %v754_v13 }
 0xcfa   :  { %v1605_v15 = vpop.eup %1604 }
 0xcfb   :  { %757 = vrot.lane.b32.xlu1 %v1605_v15, %s1633_s19 }
 0xcff   :  { %767 = vrot.lane.b32.xlu1 %v754_v13, %s1635_s3 }
 0xd6d   :  { %v758_v18 = vpop.permute.xlu1 %757 }
 0xd6e   :  { %v760_v21 = vmul.f32 %v1603_v5, %v758_v18 }
 0xd70   :  { %762 = vrot.lane.b32.xlu0 %v760_v21, %s1634_s20 }
 0xd71   :  { %v768_v23 = vpop.permute.xlu1 %767 }
 0xd72   :  { %770 = vst.msk [vmem:[#allocation3] sm:$0xff] %vm183_vm2, %v768_v23 }
 0xd79   :  { %v774_v24 = vld [vmem:[#allocation3] sm:$0xff] }
 0xd7a   :  { %858 = vrot.lane.b32.xlu1 %v774_v24, %s1634_s20 }
 0xde2   :  { %v763_v25 = vpop.permute.xlu0 %762 }
 0xde3   :  { %765 = vst.msk [vmem:[#allocation2] sm:$0xff] %vm183_vm2, %v763_v25  ;;  %772 = vst.msk [vmem:[#allocation5 + $0x20] sm:$0xff] %vm183_vm2, %v763_v25 }
 0xdea   :  { %v773_v26 = vld [vmem:[#allocation2] sm:$0xff]  ;;  %v1128_v54 = vld [vmem:[#allocation5 + $0x20] sm:$0xff] }
 0xdeb   :  { %1458 = vmatmul.mubr.msk.f32.vlgmr.msra.gmra.mrb[10].mxu1 %vm183_vm2, %v773_v26 }
 0xdec   :  { %1546 = vmatpush3.bf16.msra.mxu1 %v1696_v7  ;;  %1479 = vmatprep.mubr.msk.f32.mxu1 %vm1632_vm3, %v1630_v6 }
 0xded   :  { %1547 = vmatprep.subr.bf16.mxu1 %v1631_v9 }
 0xdf0   :  { %1549 = vmatpush3.bf16.msra.mxu1 %v1718_v14  ;;  %v859_v14 = vpop.permute.xlu1 %858 }
 0xebe   :  { %v846_v28 = vpop.f32.mrb[10].mxu1 }
 0xebf   :  { %v847_v29 = vadd.f32 %v846_v28, %v162_v27  ;;  %v1459_v30 = vpop.f32.mrb[11].mxu1 }
 0xec1   :  { %1606 = vtanh.f32 %v847_v29  ;;  %v1305_v32 = vmul.f32 -1.442695, %v847_v29 }
 0xec3   :  { %1608 = vpow2.f32 %v1305_v32 }
 0xecb   :  { %v1607_v31 = vpop.eup %1606 }
 0xecc   :  { %863 = vrot.lane.b32.xlu0 %v1607_v31, %s1633_s19 }
 0xecd   :  { %v1609_v7 = vpop.eup %1608 }
 0xece   :  { %v853_v33 = vadd.f32 1.0, %v1609_v7 }
 0xed0   :  { %1610 = vrcp.f32 %v853_v33 }
 0xeda   :  { %v1611_v6 = vpop.eup %1610 }
 0xedb   :  { %v861_v35 = vmul.f32 %v1611_v6, %v859_v14 }
 0xf3e   :  { %v864_v34 = vpop.permute.xlu0 %863 }
 0xf3f   :  { %v866_v9 = vmul.f32 %v1611_v6, %v864_v34  ;;  %v172_v34 = vadd.f32 %v1750_v20, %v1748_v19 }
 0xf41   :  { %868 = vrot.lane.b32.xlu0 %v866_v9, %s1634_s20 }
 0xfb3   :  { %v869_v16 = vpop.permute.xlu0 %868 }
 0xfb4   :  { %v871_v36 = vadd.f32 %v869_v16, %v861_v35 }
 0xfb6   :  { %1612 = vtanh.f32 %v871_v36 }
 0xfc0   :  { %v1613_v37 = vpop.eup %1612 }
 0xfc1   :  { %874 = vrot.lane.b32.xlu1 %v1613_v37, %s1633_s19 }
 0xfc5   :  { %884 = vrot.lane.b32.xlu1 %v871_v36, %s1635_s3 }
0x1033   :  { %v875_v41 = vpop.permute.xlu1 %874 }
0x1034   :  { %v877_v42 = vmul.f32 %v1611_v6, %v875_v41 }
0x1036   :  { %879 = vrot.lane.b32.xlu0 %v877_v42, %s1634_s20 }
0x1037   :  { %v885_v43 = vpop.permute.xlu1 %884 }
0x1038   :  { %887 = vst.msk [vmem:[#allocation3] sm:$0xff] %vm183_vm2, %v885_v43 }
0x103f   :  { %v891_v44 = vld [vmem:[#allocation3] sm:$0xff] }
0x1040   :  { %975 = vrot.lane.b32.xlu1 %v891_v44, %s1634_s20 }
0x10a8   :  { %v880_v45 = vpop.permute.xlu0 %879 }
0x10a9   :  { %882 = vst.msk [vmem:[#allocation2] sm:$0xff] %vm183_vm2, %v880_v45  ;;  %889 = vst.msk [vmem:[#allocation5 + $0x28] sm:$0xff] %vm183_vm2, %v880_v45 }
0x10b0   :  { %v890_v49 = vld [vmem:[#allocation2] sm:$0xff]  ;;  %v1129_v55 = vld [vmem:[#allocation5 + $0x28] sm:$0xff] }
0x10b1   :  { %1469 = vmatmul.mubr.msk.f32.vlgmr.msra.gmra.mrb[8].mxu0 %vm183_vm2, %v890_v49 }
0x10b2   :  { %1553 = vmatpush3.bf16.msra.mxu0 %v1550_v40  ;;  %1490 = vmatprep.mubr.msk.f32.mxu0 %vm183_vm2, %v1124_v50  ;;  %v976_v24 = vpop.permute.xlu1 %975 }
0x10b3   :  { %1555 = vmatprep.subr.bf16.mxu0 %v1554_v48 }
0x10b6   :  { %1557 = vmatpush3.bf16.msra.mxu0 %v1554_v48 }
0x10b9   :  { %1491 = vmatmul.mubr.msk.f32.vlgmr.msra.gmra.mrb[10].mxu0 %vm183_vm2, %v1125_v51 }
0x10ba   :  { %1493 = vmatprep.mubr.msk.f32.mxu0 %vm183_vm2, %v1126_v52 }
0x10bd   :  { %1494 = vmatmul.mubr.msk.f32.gmra.mrb[12].mxu0 %vm183_vm2, %v1127_v53 }
0x10be   :  { %1496 = vmatprep.mubr.msk.f32.mxu0 %vm183_vm2, %v1128_v54 }
0x10c1   :  { %1497 = vmatmul.mubr.msk.f32.gmra.mrb[14].mxu0 %vm183_vm2, %v1129_v55 }
0x1184   :  { %v963_v58 = vpop.f32.mrb[8].mxu0 }
0x1185   :  { %v964_v59 = vadd.f32 %v963_v58, %v167_v57  ;;  %v1470_v60 = vpop.f32.mrb[9].mxu0 }
0x1187   :  { %1614 = vtanh.f32 %v964_v59  ;;  %v1307_v17 = vmul.f32 -1.442695, %v964_v59 }
0x1189   :  { %1616 = vpow2.f32 %v1307_v17 }
0x118c   :  { %v1492_v62 = vpop.f32.mrb[10].mxu0 }
0x118d   :  { %v1239_v63 = vadd.f32 %v1492_v62, %v1884_v61  ;;  %v1233_v0 = vpop.f32.mrb[11].mxu0 }
0x118e   :  { %v1234_v1 = vadd.f32 %v1884_v61, %v1233_v0 }
0x118f   :  { %1273 = vst.msk [vmem:[%s1954_s6 + $0x8] sm:$0xff] %vm41_vm1, %v1239_v63 }
0x1190   :  { %1272 = vst.msk [vmem:[%s1954_s6] sm:$0xff] %vm41_vm1, %v1234_v1  ;;  %v1495_v22 = vpop.f32.mrb[12].mxu0 }
0x1191   :  { %v1615_v2 = vpop.eup %1614  ;;  %v1249_v3 = vadd.f32 %v1495_v22, %v1884_v61  ;;  %v1243_v4 = vpop.f32.mrb[13].mxu0 }
0x1192   :  { %v1244_v5 = vadd.f32 %v1884_v61, %v1243_v4  ;;  %980 = vrot.lane.b32.xlu0 %v1615_v2, %s1633_s19 }
0x1193   :  { %1275 = vst.msk [vmem:[%s1954_s6 + $0x18] sm:$0xff] %vm41_vm1, %v1249_v3  ;;  %v1617_v13 = vpop.eup %1616 }
0x1194   :  { %1274 = vst.msk [vmem:[%s1954_s6 + $0x10] sm:$0xff] %vm41_vm1, %v1244_v5  ;;  %v1498_v8 = vpop.f32.mrb[14].mxu0  ;;  %v970_v15 = vadd.f32 1.0, %v1617_v13 }
0x1195   :  { %v1259_v10 = vadd.f32 %v1498_v8, %v1884_v61  ;;  %v1253_v11 = vpop.f32.mrb[15].mxu0 }
0x1196   :  { %v1254_v12 = vadd.f32 %v1884_v61, %v1253_v11  ;;  %1618 = vrcp.f32 %v970_v15 }
0x1197   :  { %1277 = vst.msk [vmem:[%s1954_s6 + $0x28] sm:$0xff] %vm41_vm1, %v1259_v10 }
0x1198   :  { %1276 = vst.msk [vmem:[%s1954_s6 + $0x20] sm:$0xff] %vm41_vm1, %v1254_v12 }
0x11a0   :  { %v1619_v18 = vpop.eup %1618 }
0x11a1   :  { %v978_v25 = vmul.f32 %v1619_v18, %v976_v24 }
0x1204   :  { %v981_v21 = vpop.permute.xlu0 %980 }
0x1205   :  { %v983_v23 = vmul.f32 %v1619_v18, %v981_v21 }
0x1207   :  { %985 = vrot.lane.b32.xlu0 %v983_v23, %s1634_s20 }
0x1279   :  { %v986_v26 = vpop.permute.xlu0 %985 }
0x127a   :  { %v988_v27 = vadd.f32 %v986_v26, %v978_v25 }
0x127c   :  { %1620 = vtanh.f32 %v988_v27 }
0x1286   :  { %v1621_v28 = vpop.eup %1620 }
0x1287   :  { %991 = vrot.lane.b32.xlu1 %v1621_v28, %s1633_s19 }
0x128b   :  { %1001 = vrot.lane.b32.xlu1 %v988_v27, %s1635_s3 }
0x12f9   :  { %v992_v29 = vpop.permute.xlu1 %991 }
0x12fa   :  { %v994_v30 = vmul.f32 %v1619_v18, %v992_v29 }
0x12fc   :  { %996 = vrot.lane.b32.xlu0 %v994_v30, %s1634_s20 }
0x12fd   :  { %v1002_v31 = vpop.permute.xlu1 %1001 }
0x12fe   :  { %1004 = vst.msk [vmem:[#allocation3] sm:$0xff] %vm183_vm2, %v1002_v31 }
0x1305   :  { %v1008_v32 = vld [vmem:[#allocation3] sm:$0xff] }
0x1306   :  { %1092 = vrot.lane.b32.xlu1 %v1008_v32, %s1634_s20 }
0x136e   :  { %v997_v7 = vpop.permute.xlu0 %996 }
0x136f   :  { %999 = vst.msk [vmem:[#allocation2] sm:$0xff] %vm183_vm2, %v997_v7  ;;  %1006 = vst.msk [vmem:[#allocation5 + $0x30] sm:$0xff] %vm183_vm2, %v997_v7 }
0x1376   :  { %v1007_v33 = vld [vmem:[#allocation2] sm:$0xff] }
0x1377   :  { %v1130_v6 = vld [vmem:[#allocation5 + $0x30] sm:$0xff]  ;;  %1480 = vmatmul.mubr.msk.f32.vlgmr.msra.gmra.mrb[12].mxu1 %vm183_vm2, %v1007_v33 }
0x1378   :  { %1499 = vmatprep.mubr.msk.f32.mxu0 %vm183_vm2, %v1130_v6  ;;  %v1093_v42 = vpop.permute.xlu1 %1092 }
0x144a   :  { %v1080_v9 = vpop.f32.mrb[12].mxu1 }
0x144b   :  { %v1081_v14 = vadd.f32 %v1080_v9, %v172_v34  ;;  %v1481_v35 = vpop.f32.mrb[13].mxu1 }
0x144d   :  { %1622 = vtanh.f32 %v1081_v14  ;;  %v1309_v36 = vmul.f32 -1.442695, %v1081_v14 }
0x144f   :  { %1624 = vpow2.f32 %v1309_v36 }
0x1457   :  { %v1623_v16 = vpop.eup %1622 }
0x1458   :  { %1097 = vrot.lane.b32.xlu0 %v1623_v16, %s1633_s19 }
0x1459   :  { %v1625_v37 = vpop.eup %1624 }
0x145a   :  { %v1087_v38 = vadd.f32 1.0, %v1625_v37 }
0x145c   :  { %1626 = vrcp.f32 %v1087_v38 }
0x1466   :  { %v1627_v39 = vpop.eup %1626 }
0x1467   :  { %v1095_v43 = vmul.f32 %v1627_v39, %v1093_v42 }
0x14ca   :  { %v1098_v40 = vpop.permute.xlu0 %1097 }
0x14cb   :  { %v1100_v41 = vmul.f32 %v1627_v39, %v1098_v40 }
0x14cd   :  { %1102 = vrot.lane.b32.xlu0 %v1100_v41, %s1634_s20 }
0x153f   :  { %v1103_v19 = vpop.permute.xlu0 %1102 }
0x1540   :  { %v1105_v20 = vadd.f32 %v1103_v19, %v1095_v43 }
0x1542   :  { %1628 = vtanh.f32 %v1105_v20 }
0x154c   :  { %v1629_v44 = vpop.eup %1628 }
0x154d   :  { %1108 = vrot.lane.b32.xlu1 %v1629_v44, %s1633_s19 }
0x1551   :  { %1118 = vrot.lane.b32.xlu1 %v1105_v20, %s1635_s3 }
0x15bf   :  { %v1109_v45 = vpop.permute.xlu1 %1108 }
0x15c0   :  { %v1111_v46 = vmul.f32 %v1627_v39, %v1109_v45 }
0x15c2   :  { %1113 = vrot.lane.b32.xlu0 %v1111_v46, %s1634_s20 }
0x15c3   :  { %v1119_v47 = vpop.permute.xlu1 %1118 }
0x15c4   :  { %1121 = vst.msk [vmem:[#allocation3] sm:$0xff] %vm183_vm2, %v1119_v47 }
0x1634   :  { %v1114_v48 = vpop.permute.xlu0 %1113 }
0x1635   :  { %1116 = vst.msk [vmem:[#allocation2] sm:$0xff] %vm183_vm2, %v1114_v48  ;;  %1123 = vst.msk [vmem:[#allocation5 + $0x38] sm:$0xff] %vm183_vm2, %v1114_v48 }
0x163c   :  { %v1131_v49 = vld [vmem:[#allocation5 + $0x38] sm:$0xff] }
0x163d   :  { %1500 = vmatmul.mubr.msk.f32.gmra.mrb[16].mxu0 %vm183_vm2, %v1131_v49 }
0x1710   :  { %v1501_v50 = vpop.f32.mrb[16].mxu0 }
0x1711   :  { %v1269_v51 = vadd.f32 %v1501_v50, %v1884_v61  ;;  %v1263_v52 = vpop.f32.mrb[17].mxu0 }
0x1712   :  { %v1264_v53 = vadd.f32 %v1884_v61, %v1263_v52 }
0x1713   :  { %1279 = vst.msk [vmem:[%s1954_s6 + $0x38] sm:$0xff] %vm41_vm1, %v1269_v51 }
0x1714   :  { %1278 = vst.msk [vmem:[%s1954_s6 + $0x30] sm:$0xff] %vm41_vm1, %v1264_v53 }

</bundles_post_ra>
